<compile_context>
chip_gen: v5e
topology: v5e:2x2
jax: 0.10.0
libtpu: 0.0.40
codegen_flags: <defaults>
</compile_context>

<pallas_src>
import jax
import jax.numpy as jnp
from jax.experimental import pallas as pl
from jax.experimental.pallas import tpu as pltpu

HIDDEN = 32     # hidden_size
OUTPUT = 64     # output_size (vocab)
HPAD = 128      # lane-padded hidden / gate slot (one vreg of lanes)
OPAD = 128      # lane-padded output slot


def decoder_rnn_kernel(tok_ref,    # (T, 1)  int32 token ids
                       emb_ref,    # (OUTPUT, HIDDEN) embedding table (VMEM-resident)
                       h0_ref,     # (1, HPAD) initial hidden, zero-padded lanes
                       wih_ref,    # (HIDDEN, 3*HPAD) input proj, gate blocks [r|z|n]
                       bih_ref,    # (1, 3*HPAD) r/z biases pre-summed, n input bias
                       whh_ref,    # (HIDDEN, 3*HPAD) hidden proj, gate blocks [r|z|n]
                       bhh_ref,    # (1, 3*HPAD) only the n hidden bias is nonzero
                       wout_ref,   # (HIDDEN, OPAD) output projection
                       bout_ref,   # (1, OPAD) output bias, -1e9 in padding lanes
                       logp_ref,   # out: (T, OPAD) per-step log-softmax (dense slab)
                       hout_ref,   # out: (1, HPAD) final hidden (written once)
                       hs_ref):    # scratch: (T, HPAD) per-step hidden states
    T = hs_ref.shape[0]
    H, HP = HIDDEN, HPAD

    # ---- prologue: embedding gather (one-hot matmul), ReLU, batched input proj ----
    tok = tok_ref[...]                                                # (T, 1) int32
    vocab_ids = jax.lax.broadcasted_iota(jnp.int32, (T, OUTPUT), 1)   # (T, OUTPUT)
    onehot = jnp.where(vocab_ids == tok, 1.0, 0.0)                    # (T, OUTPUT) f32
    x = jnp.maximum(jnp.dot(onehot, emb_ref[...],
                            preferred_element_type=jnp.float32), 0.0)  # relu(embed), (T, H)
    gi = jnp.dot(x, wih_ref[...],
                 preferred_element_type=jnp.float32) + bih_ref[...]    # (T, 3*HP)

    # ---- recurrence (fully unrolled; T is small & static) ----
    whh = whh_ref[...]
    bhh = bhh_ref[...]
    h = h0_ref[...]                                                   # (1, HP); pad lanes stay 0
    for t in range(T):
        gi_t = gi[t:t + 1, :]                                         # (1, 3*HP) static slice
        gh = jnp.dot(h[:, :H], whh,
                     preferred_element_type=jnp.float32) + bhh        # (1, 3*HP), K=32 only
        r = jax.nn.sigmoid(gi_t[:, 0 * HP:1 * HP] + gh[:, 0 * HP:1 * HP])
        z = jax.nn.sigmoid(gi_t[:, 1 * HP:2 * HP] + gh[:, 1 * HP:2 * HP])
        n = jnp.tanh(gi_t[:, 2 * HP:3 * HP] + r * gh[:, 2 * HP:3 * HP])
        h = (1.0 - z) * n + z * h                                     # pad lanes remain 0
        hs_ref[pl.ds(t, 1), :] = h
    hout_ref[...] = h                                                 # single store at the end

    # ---- epilogue: batched Linear + LogSoftmax over all T steps ----
    hs = hs_ref[...]                                                  # (T, HP)
    logits = jnp.dot(hs[:, :H], wout_ref[...],
                     preferred_element_type=jnp.float32) + bout_ref[...]  # (T, OPAD)
    m = jnp.max(logits, axis=-1, keepdims=True)
    lse = m + jnp.log(jnp.sum(jnp.exp(logits - m), axis=-1, keepdims=True))
    logp_ref[...] = logits - lse                                      # dense write-once slab


def prepare_params(params):
    """One-time parameter preparation (hoisted out of the decode path)."""
    emb, w_ih, w_hh, b_ih, b_hh, w_out, b_out = [jnp.asarray(p, jnp.float32) for p in params]
    H, HP, O, OP = HIDDEN, HPAD, OUTPUT, OPAD

    # Embedding table stays in its natural (O, H) layout; gathered in-kernel.
    emb_p = emb

    # Input-side projection: gate columns in 128-lane blocks [r | z | n].
    w_ih_t = w_ih.T                                                  # (H, 3H)
    wih_p = jnp.zeros((H, 3 * HP), jnp.float32)
    wih_p = wih_p.at[:, 0 * HP:0 * HP + H].set(w_ih_t[:, 0:H])
    wih_p = wih_p.at[:, 1 * HP:1 * HP + H].set(w_ih_t[:, H:2 * H])
    wih_p = wih_p.at[:, 2 * HP:2 * HP + H].set(w_ih_t[:, 2 * H:3 * H])

    bih_p = jnp.zeros((1, 3 * HP), jnp.float32)
    bih_p = bih_p.at[0, 0 * HP:0 * HP + H].set(b_ih[0:H] + b_hh[0:H])          # r biases pre-summed
    bih_p = bih_p.at[0, 1 * HP:1 * HP + H].set(b_ih[H:2 * H] + b_hh[H:2 * H])  # z biases pre-summed
    bih_p = bih_p.at[0, 2 * HP:2 * HP + H].set(b_ih[2 * H:3 * H])              # n: input bias only

    # Hidden-side projection: same gate-block layout, natural K=H rows.
    w_hh_t = w_hh.T                                                  # (H, 3H)
    whh_p = jnp.zeros((H, 3 * HP), jnp.float32)
    whh_p = whh_p.at[:, 0 * HP:0 * HP + H].set(w_hh_t[:, 0:H])
    whh_p = whh_p.at[:, 1 * HP:1 * HP + H].set(w_hh_t[:, H:2 * H])
    whh_p = whh_p.at[:, 2 * HP:2 * HP + H].set(w_hh_t[:, 2 * H:3 * H])

    bhh_p = jnp.zeros((1, 3 * HP), jnp.float32)
    bhh_p = bhh_p.at[0, 2 * HP:2 * HP + H].set(b_hh[2 * H:3 * H])              # n: hidden bias

    # Output projection (natural K=H rows).  Padding lanes of the bias get a
    # finite -1e9 sentinel so padded logits vanish in the log-sum-exp.
    wout_p = jnp.zeros((H, OP), jnp.float32).at[:, :O].set(w_out.T)
    bout_p = jnp.full((1, OP), -1e9, jnp.float32).at[0, :O].set(b_out)

    return emb_p, wih_p, bih_p, whh_p, bhh_p, wout_p, bout_p


def decoder_rnn_decode(tokens, hidden, prepared):
    """Run T decoder steps inside ONE grid-less pallas_call.
    tokens: (T,) int32, hidden: (1, 1, HIDDEN) f32.
    Returns (log_probs (T, OUTPUT), new_hidden (1, 1, HIDDEN))."""
    emb_p, wih_p, bih_p, whh_p, bhh_p, wout_p, bout_p = prepared
    T = int(tokens.shape[0])

    # NOTE: clip keeps out-of-range ids from gathering garbage (PyTorch would raise).
    tok2d = jnp.clip(jnp.asarray(tokens, jnp.int32), 0, OUTPUT - 1).reshape(T, 1)
    h0 = jnp.zeros((1, HPAD), jnp.float32).at[:, :HIDDEN].set(
        jnp.asarray(hidden, jnp.float32).reshape(1, HIDDEN))

    vmem = pltpu.MemorySpace.VMEM
    logp_p, h_p = pl.pallas_call(
        decoder_rnn_kernel,
        out_shape=(
            jax.ShapeDtypeStruct((T, OPAD), jnp.float32),
            jax.ShapeDtypeStruct((1, HPAD), jnp.float32),
        ),
        in_specs=[pl.BlockSpec(memory_space=vmem) for _ in range(9)],
        out_specs=(pl.BlockSpec(memory_space=vmem),
                   pl.BlockSpec(memory_space=vmem)),
        scratch_shapes=[pltpu.VMEM((T, HPAD), jnp.float32)],
    )(tok2d, emb_p, h0, wih_p, bih_p, whh_p, bhh_p, wout_p, bout_p)

    logp = logp_p[:, :OUTPUT]
    h_new = h_p[:, :HIDDEN].reshape(1, 1, HIDDEN)
    return logp, h_new


def decoder_rnn_forward(token_id, hidden, prepared):
    """Single-step forward, matching DecoderRNN.forward semantics."""
    logp, h_new = decoder_rnn_decode(
        jnp.asarray(token_id, jnp.int32).reshape(1), hidden, prepared)
    return logp, h_new


def init_params(key):
    """Deterministic synthetic parameters matching nn.Embedding / nn.GRU / nn.Linear shapes."""
    ks = jax.random.split(key, 7)
    scale = 1.0 / jnp.sqrt(HIDDEN)
    emb = jax.random.normal(ks[0], (OUTPUT, HIDDEN), jnp.float32)
    w_ih = jax.random.uniform(ks[1], (3 * HIDDEN, HIDDEN), jnp.float32, -scale, scale)
    w_hh = jax.random.uniform(ks[2], (3 * HIDDEN, HIDDEN), jnp.float32, -scale, scale)
    b_ih = jax.random.uniform(ks[3], (3 * HIDDEN,), jnp.float32, -scale, scale)
    b_hh = jax.random.uniform(ks[4], (3 * HIDDEN,), jnp.float32, -scale, scale)
    w_out = jax.random.uniform(ks[5], (OUTPUT, HIDDEN), jnp.float32, -scale, scale)
    b_out = jax.random.uniform(ks[6], (OUTPUT,), jnp.float32, -scale, scale)
    return emb, w_ih, w_hh, b_ih, b_hh, w_out, b_out


def reference_forward(token_id, hidden, params):
    """Pure-JAX reference of the PyTorch forward (single step)."""
    emb, w_ih, w_hh, b_ih, b_hh, w_out, b_out = params
    H = HIDDEN
    x = jnp.maximum(emb[token_id].reshape(1, H), 0.0)
    h = hidden.reshape(1, H)
    gi = x @ w_ih.T + b_ih
    gh = h @ w_hh.T + b_hh
    r = jax.nn.sigmoid(gi[:, :H] + gh[:, :H])
    z = jax.nn.sigmoid(gi[:, H:2 * H] + gh[:, H:2 * H])
    n = jnp.tanh(gi[:, 2 * H:] + r * gh[:, 2 * H:])
    h_new = (1.0 - z) * n + z * h
    logits = h_new @ w_out.T + b_out
    logp = jax.nn.log_softmax(logits, axis=1)
    return logp, h_new.reshape(1, 1, H)


if __name__ == "__main__":
    key = jax.random.PRNGKey(0)
    pkey, hkey, tkey = jax.random.split(key, 3)
    params = init_params(pkey)
    prepared = prepare_params(params)          # one-time weight prep (hoisted)

    hidden0 = jax.random.normal(hkey, (1, 1, HIDDEN), jnp.float32)

    # --- single step (exactly the PyTorch module's forward) ---
    token_id = jnp.int32(7)
    logp, h_new = decoder_rnn_forward(token_id, hidden0, prepared)
    jax.block_until_ready((logp, h_new))
    logp_ref, h_ref = reference_forward(token_id, hidden0, params)
    assert logp.shape == (1, OUTPUT) and h_new.shape == (1, 1, HIDDEN)
    assert jnp.allclose(logp, logp_ref, atol=1e-4), "single-step log-softmax mismatch"
    assert jnp.allclose(h_new, h_ref, atol=1e-4), "single-step hidden mismatch"

    # --- T decode steps fused into ONE grid-less pallas_call ---
    T = 8
    tokens = jax.random.randint(tkey, (T,), 0, OUTPUT, dtype=jnp.int32)
    logp_seq, h_seq = decoder_rnn_decode(tokens, hidden0, prepared)
    jax.block_until_ready((logp_seq, h_seq))

    h = hidden0
    refs = []
    for t in range(T):
        lp, h = reference_forward(tokens[t], h, params)
        refs.append(lp)
    logp_ref_seq = jnp.concatenate(refs, axis=0)
    assert jnp.allclose(logp_seq, logp_ref_seq, atol=1e-4), "multi-step log-probs mismatch"
    assert jnp.allclose(h_seq, h, atol=1e-4), "multi-step hidden mismatch"

    print("KERNEL_OK")
</pallas_src>

<mosaic_0001>
module attributes {stable_mosaic.version = 11 : i64} {
  func.func @decoder_rnn_kernel(%arg0: memref<1x1xi32, #tpu.memory_space<vmem>>, %arg1: memref<64x32xf32, #tpu.memory_space<vmem>>, %arg2: memref<1x128xf32, #tpu.memory_space<vmem>>, %arg3: memref<32x384xf32, #tpu.memory_space<vmem>>, %arg4: memref<1x384xf32, #tpu.memory_space<vmem>>, %arg5: memref<32x384xf32, #tpu.memory_space<vmem>>, %arg6: memref<1x384xf32, #tpu.memory_space<vmem>>, %arg7: memref<32x128xf32, #tpu.memory_space<vmem>>, %arg8: memref<1x128xf32, #tpu.memory_space<vmem>>, %arg9: memref<1x128xf32, #tpu.memory_space<vmem>>, %arg10: memref<1x128xf32, #tpu.memory_space<vmem>>, %arg11: memref<1x128xf32, #tpu.memory_space<vmem>>) attributes {dimension_semantics = [], scalar_prefetch = 0 : i64, scratch_operands = 1 : i64, tpu.core_type = #tpu.core_type<tc>} {
    %c0 = arith.constant 0 : index
    %c0_0 = arith.constant 0 : index
    %0 = vector.load %arg0[%c0, %c0_0] : memref<1x1xi32, #tpu.memory_space<vmem>>, vector<1x1xi32>
    %1 = tpu.iota {dimensions = array<i32: 1>} : vector<1x64xi32>
    %2 = vector.broadcast %0 : vector<1x1xi32> to vector<1x64xi32>
    %3 = arith.cmpi eq, %1, %2 : vector<1x64xi32>
    %cst = arith.constant 1.000000e+00 : f32
    %cst_1 = arith.constant 0.000000e+00 : f32
    %4 = vector.broadcast %cst : f32 to vector<1x64xf32>
    %5 = vector.broadcast %cst_1 : f32 to vector<1x64xf32>
    %6 = arith.select %3, %4, %5 : vector<1x64xi1>, vector<1x64xf32>
    %c0_2 = arith.constant 0 : index
    %c0_3 = arith.constant 0 : index
    %7 = vector.load %arg1[%c0_2, %c0_3] : memref<64x32xf32, #tpu.memory_space<vmem>>, vector<64x32xf32>
    %cst_4 = arith.constant dense<0.000000e+00> : vector<1x32xf32>
    %8 = tpu.matmul %6, %7, %cst_4 {dimension_numbers = #tpu.dot_dimension_numbers<[1], [0], [0], [1], [0, 0, 1, 1], [], []>} : vector<1x64xf32>, vector<64x32xf32>, vector<1x32xf32> -> vector<1x32xf32>
    %cst_5 = arith.constant 0.000000e+00 : f32
    %9 = vector.broadcast %cst_5 : f32 to vector<1x32xf32>
    %10 = arith.maximumf %8, %9 : vector<1x32xf32>
    %c0_6 = arith.constant 0 : index
    %c0_7 = arith.constant 0 : index
    %11 = vector.load %arg3[%c0_6, %c0_7] : memref<32x384xf32, #tpu.memory_space<vmem>>, vector<32x384xf32>
    %cst_8 = arith.constant dense<0.000000e+00> : vector<1x384xf32>
    %12 = tpu.matmul %10, %11, %cst_8 {dimension_numbers = #tpu.dot_dimension_numbers<[1], [0], [0], [1], [0, 0, 1, 1], [], []>} : vector<1x32xf32>, vector<32x384xf32>, vector<1x384xf32> -> vector<1x384xf32>
    %c0_9 = arith.constant 0 : index
    %c0_10 = arith.constant 0 : index
    %13 = vector.load %arg4[%c0_9, %c0_10] : memref<1x384xf32, #tpu.memory_space<vmem>>, vector<1x384xf32>
    %14 = arith.addf %12, %13 : vector<1x384xf32>
    %c0_11 = arith.constant 0 : index
    %c0_12 = arith.constant 0 : index
    %15 = vector.load %arg5[%c0_11, %c0_12] : memref<32x384xf32, #tpu.memory_space<vmem>>, vector<32x384xf32>
    %c0_13 = arith.constant 0 : index
    %c0_14 = arith.constant 0 : index
    %16 = vector.load %arg6[%c0_13, %c0_14] : memref<1x384xf32, #tpu.memory_space<vmem>>, vector<1x384xf32>
    %c0_15 = arith.constant 0 : index
    %c0_16 = arith.constant 0 : index
    %17 = vector.load %arg2[%c0_15, %c0_16] : memref<1x128xf32, #tpu.memory_space<vmem>>, vector<1x128xf32>
    %18 = vector.extract_strided_slice %17 {offsets = [0, 0], sizes = [1, 32], strides = [1, 1]} : vector<1x128xf32> to vector<1x32xf32>
    %cst_17 = arith.constant dense<0.000000e+00> : vector<1x384xf32>
    %19 = tpu.matmul %18, %15, %cst_17 {dimension_numbers = #tpu.dot_dimension_numbers<[1], [0], [0], [1], [0, 0, 1, 1], [], []>} : vector<1x32xf32>, vector<32x384xf32>, vector<1x384xf32> -> vector<1x384xf32>
    %20 = arith.addf %19, %16 : vector<1x384xf32>
    %21 = vector.extract_strided_slice %14 {offsets = [0, 0], sizes = [1, 128], strides = [1, 1]} : vector<1x384xf32> to vector<1x128xf32>
    %22 = vector.extract_strided_slice %20 {offsets = [0, 0], sizes = [1, 128], strides = [1, 1]} : vector<1x384xf32> to vector<1x128xf32>
    %23 = arith.addf %21, %22 : vector<1x128xf32>
    %24 = arith.negf %23 : vector<1x128xf32>
    %25 = math.exp %24 : vector<1x128xf32>
    %cst_18 = arith.constant 1.000000e+00 : f32
    %26 = vector.broadcast %cst_18 : f32 to vector<1x128xf32>
    %27 = arith.addf %26, %25 : vector<1x128xf32>
    %28 = arith.divf %26, %27 : vector<1x128xf32>
    %29 = vector.extract_strided_slice %14 {offsets = [0, 128], sizes = [1, 128], strides = [1, 1]} : vector<1x384xf32> to vector<1x128xf32>
    %30 = vector.extract_strided_slice %20 {offsets = [0, 128], sizes = [1, 128], strides = [1, 1]} : vector<1x384xf32> to vector<1x128xf32>
    %31 = arith.addf %29, %30 : vector<1x128xf32>
    %32 = arith.negf %31 : vector<1x128xf32>
    %33 = math.exp %32 : vector<1x128xf32>
    %cst_19 = arith.constant 1.000000e+00 : f32
    %34 = vector.broadcast %cst_19 : f32 to vector<1x128xf32>
    %35 = arith.addf %34, %33 : vector<1x128xf32>
    %36 = arith.divf %34, %35 : vector<1x128xf32>
    %37 = vector.extract_strided_slice %14 {offsets = [0, 256], sizes = [1, 128], strides = [1, 1]} : vector<1x384xf32> to vector<1x128xf32>
    %38 = vector.extract_strided_slice %20 {offsets = [0, 256], sizes = [1, 128], strides = [1, 1]} : vector<1x384xf32> to vector<1x128xf32>
    %39 = arith.mulf %28, %38 : vector<1x128xf32>
    %40 = arith.addf %37, %39 : vector<1x128xf32>
    %41 = math.tanh %40 : vector<1x128xf32>
    %cst_20 = arith.constant 1.000000e+00 : f32
    %42 = vector.broadcast %cst_20 : f32 to vector<1x128xf32>
    %43 = arith.subf %42, %36 : vector<1x128xf32>
    %44 = arith.mulf %43, %41 : vector<1x128xf32>
    %45 = arith.mulf %36, %17 : vector<1x128xf32>
    %46 = arith.addf %44, %45 : vector<1x128xf32>
    %c0_21 = arith.constant 0 : index
    %c0_22 = arith.constant 0 : index
    %47 = vector.load %arg11[%c0_21, %c0_22] : memref<1x128xf32, #tpu.memory_space<vmem>>, vector<1x128xf32>
    tpu.vector_store %arg11[%c0_21, %c0_22], %46 {strides = array<i32>} : memref<1x128xf32, #tpu.memory_space<vmem>>, vector<1x128xf32>,
    %c0_23 = arith.constant 0 : index
    %c0_24 = arith.constant 0 : index
    %48 = vector.load %arg10[%c0_23, %c0_24] : memref<1x128xf32, #tpu.memory_space<vmem>>, vector<1x128xf32>
    tpu.vector_store %arg10[%c0_23, %c0_24], %46 {strides = array<i32>} : memref<1x128xf32, #tpu.memory_space<vmem>>, vector<1x128xf32>,
    %c0_25 = arith.constant 0 : index
    %c0_26 = arith.constant 0 : index
    %49 = vector.load %arg11[%c0_25, %c0_26] : memref<1x128xf32, #tpu.memory_space<vmem>>, vector<1x128xf32>
    %50 = vector.extract_strided_slice %49 {offsets = [0, 0], sizes = [1, 32], strides = [1, 1]} : vector<1x128xf32> to vector<1x32xf32>
    %c0_27 = arith.constant 0 : index
    %c0_28 = arith.constant 0 : index
    %51 = vector.load %arg7[%c0_27, %c0_28] : memref<32x128xf32, #tpu.memory_space<vmem>>, vector<32x128xf32>
    %cst_29 = arith.constant dense<0.000000e+00> : vector<1x128xf32>
    %52 = tpu.matmul %50, %51, %cst_29 {dimension_numbers = #tpu.dot_dimension_numbers<[1], [0], [0], [1], [0, 0, 1, 1], [], []>} : vector<1x32xf32>, vector<32x128xf32>, vector<1x128xf32> -> vector<1x128xf32>
    %c0_30 = arith.constant 0 : index
    %c0_31 = arith.constant 0 : index
    %53 = vector.load %arg8[%c0_30, %c0_31] : memref<1x128xf32, #tpu.memory_space<vmem>>, vector<1x128xf32>
    %54 = arith.addf %52, %53 : vector<1x128xf32>
    %cst_32 = arith.constant dense<0xFF800000> : vector<1xf32>
    %55 = vector.multi_reduction <maximumf>, %54, %cst_32 [1] : vector<1x128xf32> to vector<1xf32>
    %56 = vector.shape_cast %55 : vector<1xf32> to vector<1x1xf32>
    %57 = vector.broadcast %56 : vector<1x1xf32> to vector<1x128xf32>
    %58 = arith.subf %54, %57 : vector<1x128xf32>
    %59 = math.exp %58 : vector<1x128xf32>
    %cst_33 = arith.constant dense<0.000000e+00> : vector<1xf32>
    %60 = vector.multi_reduction <add>, %59, %cst_33 [1] : vector<1x128xf32> to vector<1xf32>
    %61 = vector.shape_cast %60 : vector<1xf32> to vector<1x1xf32>
    %62 = math.log %61 : vector<1x1xf32>
    %63 = arith.addf %56, %62 : vector<1x1xf32>
    %64 = vector.broadcast %63 : vector<1x1xf32> to vector<1x128xf32>
    %65 = arith.subf %54, %64 : vector<1x128xf32>
    %c0_34 = arith.constant 0 : index
    %c0_35 = arith.constant 0 : index
    %66 = vector.load %arg9[%c0_34, %c0_35] : memref<1x128xf32, #tpu.memory_space<vmem>>, vector<1x128xf32>
    tpu.vector_store %arg9[%c0_34, %c0_35], %65 {strides = array<i32>} : memref<1x128xf32, #tpu.memory_space<vmem>>, vector<1x128xf32>,
    return
  }
}

</mosaic_0001>

<bundles_post_ra>
// kernel: tpu_custom_call.1
= control target key start
LH: loop header
LB: loop body
LE: loop exit
PB: predicated region body
PF: predicated region fallthrough
CT: control target
= control target key end

     0   :  { %s793_s0 = inlined_call_operand.<no memory space> [shape: s32[1,1], index: 0, kind: input, shape index: {}]   ;;  %s794_s1 = inlined_call_operand.vmem [shape: f32[64,32], index: 1, kind: input, shape index: {}]   ;;  %s795_s2 = inlined_call_operand.hbm [shape: f32[1,128], index: 2, kind: input, shape index: {}]   ;;  %s796_s3 = inlined_call_operand.vmem [shape: f32[32,384], index: 3, kind: input, shape index: {}]   ;;  %s797_s4 = inlined_call_operand.vmem [shape: f32[1,384], index: 4, kind: input, shape index: {}]   ;;  %s798_s5 = inlined_call_operand.hbm [shape: f32[32,384], index: 5, kind: input, shape index: {}]   ;;  %s799_s6 = inlined_call_operand.hbm [shape: f32[1,384], index: 6, kind: input, shape index: {}]   ;;  %s800_s7 = inlined_call_operand.hbm [shape: f32[32,128], index: 7, kind: input, shape index: {}]   ;;  %s801_s8 = inlined_call_operand.vmem [shape: f32[1,128], index: 8, kind: input, shape index: {}]   ;;  %s802_s9 = inlined_call_operand.hbm [shape: f32[1,128], index: 9, kind: output, shape index: {0}]   ;;  %s803_s10 = inlined_call_operand.hbm [shape: f32[1,128], index: 10, kind: output, shape index: {1}]  }
   0x1   :  { %v16_v0 = vstv %s793_s0 }
   0x2   :  { %17 = vst [vmem:[#allocation3] sm:$0x1] %v16_v0 }
   0x3   :  { %18 = vsyncpa [#allocation5], 0 }
   0x4   :  { %19 = vsyncpa [#allocation8], 0 }
   0x5   :  { %20 = vsyncpa [#allocation11], 0 }
   0x6   :  { %21 = vsyncpa [#allocation6], 0  ;;  %s46_s17 = sshll.u32 %s798_s5, 4  ;;  %s47_s17 = int_to_ptr.hbm [resolvable:$true] %s46_s17 }
   0x7   :  { %22 = vsyncpa [#allocation14], 0  ;;  %s626_s18 = smov [#allocation7]   ;;  %s32_s22 = sshll.u32 %s795_s2, 4  ;;  %s33_s22 = int_to_ptr.hbm [resolvable:$true] %s32_s22 }
   0x8   :  { %s48_s19 = sshll.u32 %s626_s18, 4  ;;  %s627_s23 = smov 384   ;;  %s49_s19 = int_to_ptr.vmem [resolvable:$true] %s48_s19 }
   0x9   :  { %s628_s0 = smov 24   ;;  %s629_s24 = smov [#allocation4]  }
   0xa   :  { %54 = dma.hbm_to_vmem [thread:$0]  %s47_s17, 1536, %s49_s19, [#allocation8], %s627_s23, %s627_s23, %s628_s0  }
   0xb   :  { %s34_s25 = sshll.u32 %s629_s24, 4  ;;  %s60_s28 = sshll.u32 %s799_s6, 4  ;;  %s35_s25 = int_to_ptr.vmem [resolvable:$true] %s34_s25  ;;  %s61_s28 = int_to_ptr.hbm [resolvable:$true] %s60_s28 }
   0xc   :  { %37 = dma.hbm_to_vmem [thread:$0]  %s33_s22, 16, %s35_s25, [#allocation5]  }
   0xd   :  { %s70_s30 = sshll.u32 %s800_s7, 4  ;;  %s630_s11 = smov [#allocation9]   ;;  %s71_s30 = int_to_ptr.hbm [resolvable:$true] %s70_s30 }
   0xe   :  { %s62_s12 = sshll.u32 %s630_s11, 4  ;;  %s631_s2 = smov [#allocation10]   ;;  %s63_s12 = int_to_ptr.vmem [resolvable:$true] %s62_s12 }
   0xf   :  { %65 = dma.hbm_to_vmem [thread:$0]  %s61_s28, 48, %s63_s12, [#allocation8]  }
  0x10   :  { %s72_s13 = sshll.u32 %s631_s2, 4  ;;  %s632_s14 = smov 128   ;;  %s73_s13 = int_to_ptr.vmem [resolvable:$true] %s72_s13 }
  0x11   :  { %s633_s15 = smov 8  }
  0x12   :  { %78 = dma.hbm_to_vmem [thread:$0]  %s71_s30, 512, %s73_s13, [#allocation11], %s632_s14, %s632_s14, %s633_s15  }
  0x13   :  { %616 = dma.done.wait [#allocation5], 16  }
  0x14   :  { %617 = vsyncadd [#allocation5], 4294967280 }
  0x15   :  { %618 = dma.done.wait [#allocation8], 1584  }
  0x16   :  { %619 = vsyncadd [#allocation8], 4294965712 }
  0x17   :  { %620 = dma.done.wait [#allocation11], 512  }
  0x18   :  { %621 = vsyncadd [#allocation11], 4294966784  ;;  %v634_v1 = vmov 0   ;;  %v97_v2 = vld [vmem:[#allocation3] sm:$0x1]  ;;  %v113_v3 = vld [vmem:[%s794_s1 + $0x38] sm:$0xff]  ;;  %v98_v17 = vlaneseq }
  0x19   :  { %457 = vset.pattern.permute.xlu0 %v634_v1  ;;  %v112_v4 = vld [vmem:[%s794_s1 + $0x30] sm:$0xff]  ;;  %126 = vmatpush.msra.mxu0 %v113_v3  ;;  %v111_v5 = vld [vmem:[%s794_s1 + $0x28] sm:$0xff]  ;;  %v110_v6 = vld [vmem:[%s794_s1 + $0x20] sm:$0xff]  ;;  %vm114_vm0 = vcmask 523264   ;;  %v635_v21 = vmov 0.0   ;;  %vm159_vm2 = vcmask 261120  }
  0x1a   :  { %101 = vperm.xlu0 %457, %v97_v2   ;;  %v109_v7 = vld [vmem:[%s794_s1 + $0x18] sm:$0xff]  ;;  %v108_v8 = vld [vmem:[%s794_s1 + $0x10] sm:$0xff]  ;;  %v107_v9 = vld [vmem:[%s794_s1 + $0x8] sm:$0xff]  ;;  %v99_v18 = vand.u32 127, %v98_v17  ;;  %vm385_vm11 = vcmask 1040384   ;;  %s636_s5 = smov [#allocation13]  }
  0x1b   :  { %127 = vmatpush.msra.mxu0 %v112_v4  ;;  %v106_v10 = vld [vmem:[%s794_s1] sm:$0xff]  ;;  %v148_v11 = vld [vmem:[%s796_s3 + $0x48] sm:$0xff]  ;;  %v149_v12 = vld [vmem:[%s796_s3 + $0x50] sm:$0xff]  ;;  %s416_s29 = sshll.u32 %s636_s5, 4  ;;  %s418_s12 = sshll.u32 %s803_s10, 4  ;;  %s417_s29 = int_to_ptr.vmem [resolvable:$true] %s416_s29  ;;  %s419_s12 = int_to_ptr.hbm [resolvable:$true] %s418_s12 }
  0x1c   :  { %v150_v13 = vld [vmem:[%s796_s3 + $0x58] sm:$0xff]  ;;  %175 = vmatpush.msra.mxu1 %v148_v11  ;;  %195 = vmatpush.msra.mxu2 %v149_v12  ;;  %v145_v14 = vld [vmem:[%s796_s3 + $0x30] sm:$0xff]  ;;  %v147_v16 = vld [vmem:[%s796_s3 + $0x40] sm:$0xff]  ;;  %s407_s1 = sshll.u32 %s802_s9, 4  ;;  %s408_s1 = int_to_ptr.hbm [resolvable:$true] %s407_s1 }
  0x1d   :  { %128 = vmatpush.msra.mxu0 %v111_v5  ;;  %v146_v15 = vld [vmem:[%s796_s3 + $0x38] sm:$0xff]  ;;  %215 = vmatpush.msra.mxu3 %v150_v13  ;;  %v143_v24 = vld [vmem:[%s796_s3 + $0x20] sm:$0xff]  ;;  %v144_v25 = vld [vmem:[%s796_s3 + $0x28] sm:$0xff] }
  0x1e   :  { %176 = vmatpush.msra.mxu1 %v145_v14  ;;  %196 = vmatpush.msra.mxu2 %v146_v15  ;;  %v142_v23 = vld [vmem:[%s796_s3 + $0x18] sm:$0xff]  ;;  %v139_v26 = vld [vmem:[%s796_s3] sm:$0xff]  ;;  %v140_v27 = vld [vmem:[%s796_s3 + $0x8] sm:$0xff] }
  0x1f   :  { %129 = vmatpush.msra.mxu0 %v110_v6  ;;  %216 = vmatpush.msra.mxu3 %v147_v16  ;;  %v141_v28 = vld [vmem:[%s796_s3 + $0x10] sm:$0xff]  ;;  %v230_v32 = vld [vmem:[#allocation7 + $0x38] sm:$0xff]  ;;  %v227_v34 = vld [vmem:[#allocation7 + $0x20] sm:$0xff] }
  0x20   :  { %177 = vmatpush.msra.mxu1 %v142_v23  ;;  %197 = vmatpush.msra.mxu2 %v143_v24  ;;  %v232_v29 = vld [vmem:[#allocation7 + $0x48] sm:$0xff]  ;;  %v233_v30 = vld [vmem:[#allocation7 + $0x50] sm:$0xff]  ;;  %v226_v33 = vld [vmem:[#allocation7 + $0x18] sm:$0xff] }
  0x21   :  { %130 = vmatpush.msra.mxu0 %v109_v7  ;;  %217 = vmatpush.msra.mxu3 %v144_v25  ;;  %v229_v31 = vld [vmem:[#allocation7 + $0x30] sm:$0xff]  ;;  %v223_v35 = vld [vmem:[#allocation7] sm:$0xff]  ;;  %v224_v36 = vld [vmem:[#allocation7 + $0x8] sm:$0xff] }
  0x22   :  { %178 = vmatpush.msra.mxu1 %v139_v26  ;;  %198 = vmatpush.msra.mxu2 %v140_v27  ;;  %v234_v37 = vld [vmem:[#allocation7 + $0x58] sm:$0xff]  ;;  %v231_v38 = vld [vmem:[#allocation7 + $0x40] sm:$0xff]  ;;  %v228_v39 = vld [vmem:[#allocation7 + $0x28] sm:$0xff] }
  0x23   :  { %131 = vmatpush.msra.mxu0 %v108_v8  ;;  %218 = vmatpush.msra.mxu3 %v141_v28  ;;  %v225_v40 = vld [vmem:[#allocation7 + $0x10] sm:$0xff]  ;;  %v771_v43 = vld [vmem:[#allocation4] sm:$0x1]  ;;  %v235_v46 = vld [vmem:[#allocation9] sm:$0x7] }
  0x24   :  { %259 = vmatpush.msrb.mxu1 %v232_v29  ;;  %279 = vmatpush.msrb.mxu2 %v233_v30  ;;  %v151_v45 = vld [vmem:[%s797_s4] sm:$0x7]  ;;  %v238_v48 = vperm.slane %v235_v46, 0  ;;  %v239_v55 = vperm.slane %v235_v46, 1  ;;  %v359_v1 = vld [vmem:[#allocation10 + $0x10] sm:$0xff]  ;;  %v358_v4 = vld [vmem:[#allocation10 + $0x8] sm:$0xff] }
  0x25   :  { %132 = vmatpush.msra.mxu0 %v107_v9  ;;  %299 = vmatpush.msrb.mxu3 %v234_v37  ;;  %v153_v47 = vperm.slane %v151_v45, 0  ;;  %v154_v53 = vperm.slane %v151_v45, 1  ;;  %v360_v0 = vld [vmem:[#allocation10 + $0x18] sm:$0xff]  ;;  %v357_v6 = vld [vmem:[#allocation10] sm:$0xff]  ;;  %v240_v9 = vperm.slane %v235_v46, 2  ;;  %v155_v16 = vperm.slane %v151_v45, 2 }
  0x26   :  { %260 = vmatpush.msrb.mxu1 %v229_v31  ;;  %280 = vmatpush.msrb.mxu2 %v230_v32 }
  0x27   :  { %133 = vmatpush.msra.mxu0 %v106_v10  ;;  %300 = vmatpush.msrb.mxu3 %v231_v38 }
  0x28   :  { %261 = vmatpush.msrb.mxu1 %v226_v33  ;;  %281 = vmatpush.msrb.mxu2 %v227_v34 }
  0x29   :  { %301 = vmatpush.msrb.mxu3 %v228_v39  ;;  %377 = vmatpush.msrb.mxu0 %v360_v0 }
  0x2a   :  { %262 = vmatpush.msrb.mxu1 %v223_v35  ;;  %282 = vmatpush.msrb.mxu2 %v224_v36 }
  0x2b   :  { %302 = vmatpush.msrb.mxu3 %v225_v40  ;;  %378 = vmatpush.msrb.mxu0 %v359_v1  ;;  %v361_v40 = vld [vmem:[%s801_s8] sm:$0x1]  ;;  %s637_s8 = smov [#allocation12]  }
  0x2c   :  { %s405_s2 = sshll.u32 %s637_s8, 4  ;;  %s406_s2 = int_to_ptr.vmem [resolvable:$true] %s405_s2 }
  0x2d   :  { %379 = vmatpush.msrb.mxu0 %v358_v4 }
  0x2f   :  { %380 = vmatpush.msrb.mxu0 %v357_v6 }
  0x8c   :  { %v102_v19 = vpop.permute.xlu0 %101 }
  0x8d   :  { %v103_v20 = vperm.slane %v102_v19, 0 }
  0x8f   :  { %vm104_vm1 = vcmp.eq.s32.totalorder %v99_v18, %v103_v20 }
  0x90   :  { %v105_v22 = vsel %vm104_vm1, 1.0, %v635_v21 }
  0x91   :  { %435 = vmatmul.msk.f32.vlgmr.msra.gmra.mxu0 %vm114_vm0, %v105_v22 }
 0x10e   :  { %v135_v41 = vpop.f32.mrf.mxu0 }
 0x10f   :  { %v138_v42 = vmax.f32 %v135_v41, 0.0 }
 0x111   :  { %436 = vmatmul.msk.f32.vlgmr.msra.gmra.mxu1 %vm159_vm2, %v138_v42  ;;  %437 = vmatmul.msk.f32.vlgmr.msra.gmra.mxu2 %vm159_vm2, %v138_v42 }
 0x112   :  { %438 = vmatmul.msk.f32.vlgmr.msra.gmra.mxu3 %vm159_vm2, %v138_v42 }
 0x119   :  { %439 = vmatmul.msk.f32.vlgmr.msrb.gmra.mxu1 %vm159_vm2, %v771_v43  ;;  %440 = vmatmul.msk.f32.vlgmr.msrb.gmra.mxu2 %vm159_vm2, %v771_v43 }
 0x11a   :  { %441 = vmatmul.msk.f32.vlgmr.msrb.gmra.mxu3 %vm159_vm2, %v771_v43 }
 0x18e   :  { %v180_v44 = vpop.f32.mrf.mxu1 }
 0x18f   :  { %v181_v51 = vadd.f32 %v180_v44, %v153_v47 }
 0x194   :  { %v200_v49 = vpop.f32.mrf.mxu2 }
 0x195   :  { %v201_v58 = vadd.f32 %v200_v49, %v154_v53  ;;  %v220_v2 = vpop.f32.mrf.mxu3 }
 0x196   :  { %v264_v50 = vpop.f32.mrf.mxu1  ;;  %v221_v23 = vadd.f32 %v220_v2, %v155_v16 }
 0x197   :  { %v265_v52 = vadd.f32 %v264_v50, %v238_v48 }
 0x199   :  { %v307_v54 = vadd.f32 %v265_v52, %v181_v51 }
 0x19b   :  { %v442_v56 = vmul.f32 -1.442695, %v307_v54 }
 0x19c   :  { %v284_v57 = vpop.f32.mrf.mxu2 }
 0x19d   :  { %458 = vpow2.f32 %v442_v56  ;;  %v285_v59 = vadd.f32 %v284_v57, %v239_v55  ;;  %v304_v11 = vpop.f32.mrf.mxu3 }
 0x19e   :  { %v305_v18 = vadd.f32 %v304_v11, %v240_v9 }
 0x19f   :  { %v327_v60 = vadd.f32 %v285_v59, %v201_v58 }
 0x1a1   :  { %v443_v61 = vmul.f32 -1.442695, %v327_v60 }
 0x1a3   :  { %v459_v62 = vpop.eup %458  ;;  %460 = vpow2.f32 %v443_v61 }
 0x1a4   :  { %v311_v63 = vadd.f32 1.0, %v459_v62 }
 0x1a6   :  { %462 = vrcp.f32 %v311_v63  ;;  %v323_v12 = vand.u32 2147483648, %v311_v63  ;;  %v321_v14 = vand.u32 2147483647, %v311_v63  ;;  %vm317_vm4 = vweird.f32 %v311_v63 }
 0x1a8   :  { %v324_v20 = vor.u32 1.1754944e-38, %v323_v12  ;;  %vm322_vm6 = vcmp.eq.f32.partialorder %v321_v14, 8.507059e+37 }
 0x1a9   :  { %v461_v3 = vpop.eup %460 }
 0x1aa   :  { %v331_v5 = vadd.f32 1.0, %v461_v3 }
 0x1ac   :  { %v463_v7 = vpop.eup %462  ;;  %464 = vrcp.f32 %v331_v5  ;;  %v343_v26 = vand.u32 2147483648, %v331_v5  ;;  %v341_v28 = vand.u32 2147483647, %v331_v5  ;;  %vm337_vm8 = vweird.f32 %v331_v5 }
 0x1ad   :  { %v313_v8 = vmul.f32 %v463_v7, %v311_v63  ;;  %vm318_vm3 = vweird.f32 %v463_v7 }
 0x1ae   :  { %vm319_vm5 = vmor %vm317_vm4, %vm318_vm3  ;;  %v344_v31 = vor.u32 1.1754944e-38, %v343_v26  ;;  %vm342_vm10 = vcmp.eq.f32.partialorder %v341_v28, 8.507059e+37 }
 0x1af   :  { %v314_v10 = vsub.f32 1.0, %v313_v8 }
 0x1b1   :  { %v315_v13 = vmul.f32 %v463_v7, %v314_v10 }
 0x1b2   :  { %v465_v15 = vpop.eup %464 }
 0x1b3   :  { %v333_v17 = vmul.f32 %v465_v15, %v331_v5  ;;  %v316_v19 = vadd.f32 %v463_v7, %v315_v13  ;;  %vm338_vm7 = vweird.f32 %v465_v15 }
 0x1b4   :  { %vm339_vm9 = vmor %vm337_vm8, %vm338_vm7 }
 0x1b5   :  { %v334_v21 = vsub.f32 1.0, %v333_v17  ;;  %v320_v22 = vsel %vm319_vm5, %v463_v7, %v316_v19 }
 0x1b6   :  { %v325_v24 = vsel %vm322_vm6, %v324_v20, %v320_v22 }
 0x1b7   :  { %v335_v25 = vmul.f32 %v465_v15, %v334_v21  ;;  %v347_v27 = vmul.f32 %v325_v24, %v305_v18 }
 0x1b9   :  { %v336_v29 = vadd.f32 %v465_v15, %v335_v25  ;;  %v348_v30 = vadd.f32 %v347_v27, %v221_v23 }
 0x1bb   :  { %v340_v32 = vsel %vm339_vm9, %v465_v15, %v336_v29  ;;  %466 = vtanh.f32 %v348_v30 }
 0x1bc   :  { %v345_v33 = vsel %vm342_vm10, %v344_v31, %v340_v32 }
 0x1bd   :  { %v350_v34 = vsub.f32 1.0, %v345_v33  ;;  %v352_v37 = vmul.f32 %v345_v33, %v771_v43 }
 0x1c1   :  { %v467_v35 = vpop.eup %466 }
 0x1c2   :  { %v351_v36 = vmul.f32 %v467_v35, %v350_v34 }
 0x1c4   :  { %v353_v38 = vadd.f32 %v352_v37, %v351_v36 }
 0x1c6   :  { %354 = vst [vmem:[#allocation2] sm:$0x1] %v353_v38 }
 0x1c7   :  { %355 = vst [vmem:[#allocation13] sm:$0x1] %v353_v38 }
 0x1c8   :  { %421 = dma.vmem_to_hbm [thread:$0]  %s417_s29, 16, %s419_s12, [#allocation14]  }
 0x1cd   :  { %v356_v39 = vld [vmem:[#allocation2] sm:$0x1] }
 0x1ce   :  { %444 = vmatmul.msk.f32.vlgmr.msrb.gmra.mxu0 %vm159_vm2, %v356_v39 }
 0x24b   :  { %v382_v41 = vpop.f32.mrf.mxu0 }
 0x24c   :  { %v383_v42 = vadd.f32 %v382_v41, %v361_v40 }
 0x24e   :  { %v386_v44 = vsel %vm385_vm11, %v383_v42, -inf }
 0x24f   :  { %387 = vmax.xlane.f32.xlu0 %v386_v44 }
 0x2c2   :  { %v388_v45 = vpop.xlane.xlu0 %387 }
 0x2c3   :  { %v389_v46 = vsub.f32 %v383_v42, %v388_v45 }
 0x2c5   :  { %v390_v47 = vmul.f32 1.442695, %v389_v46 }
 0x2c7   :  { %468 = vpow2.f32 %v390_v47 }
 0x2cd   :  { %v469_v43 = vpop.eup %468 }
 0x2ce   :  { %v392_v48 = vsel %vm385_vm11, %v469_v43, 0.0 }
 0x2cf   :  { %393 = vadd.xlane.f32.xlu1 %v392_v48 }
 0x342   :  { %v394_v49 = vpop.xlane.xlu1 %393 }
 0x343   :  { %470 = vlog2.f32 %v394_v49 }
 0x349   :  { %v471_v50 = vpop.eup %470 }
 0x34a   :  { %v396_v51 = vmul.f32 0.6931472, %v471_v50 }
 0x34c   :  { %v397_v52 = vadd.f32 %v396_v51, %v388_v45 }
 0x34e   :  { %v398_v53 = vsub.f32 %v383_v42, %v397_v52 }
 0x350   :  { %399 = vst [vmem:[#allocation12] sm:$0x1] %v398_v53 }
 0x351   :  { %410 = dma.vmem_to_hbm [thread:$0]  %s406_s2, 16, %s408_s1, [#allocation6]  }
 0x352   :  { %622 = dma.done.wait [#allocation6], 16  }
 0x353   :  { %623 = vsyncadd [#allocation6], 4294967280 }
 0x354   :  { %624 = dma.done.wait [#allocation14], 16  }
 0x355   :  { %625 = vsyncadd [#allocation14], 4294967280 }
 0x356   :  { %430 = vsyncpa [#allocation5], 1 }
 0x357   :  { %431 = vsyncpa [#allocation8], 1 }
 0x358   :  { %432 = vsyncpa [#allocation11], 1 }
 0x359   :  { %433 = vsyncpa [#allocation6], 1 }
 0x35a   :  { %434 = vsyncpa [#allocation14], 1 }

</bundles_post_ra>
